<compile_context>
chip_gen: v6e
topology: v6e:2x2x1
jax: 0.10.0
libtpu: 0.0.40
codegen_flags: <defaults>
</compile_context>

<pallas_src>
import jax
import jax.numpy as jnp
from jax.experimental import pallas as pl
from jax.experimental.pallas import tpu as pltpu

KSIZE = 4
STRIDE = 2


def _round_up(x, m):
    return ((x + m - 1) // m) * m


def _gemm_bias_relu_kernel(p_ref, w_ref, b_ref, o_ref):
    # p_ref: (TM, K)        bf16 im2col patch rows (batched over all images)
    # w_ref: (K, Cout_pad)  bf16 flattened conv weights (VMEM-resident)
    # b_ref: (1, Cout_pad)  f32 bias
    # o_ref: (TM, Cout_pad) conv output rows, bias + ReLU fused, lane-dense
    acc = jnp.dot(p_ref[...], w_ref[...], preferred_element_type=jnp.float32)
    acc = acc + b_ref[...]
    o_ref[...] = jnp.maximum(acc, 0.0).astype(o_ref.dtype)


def _pick_tm(rows):
    # >=256-row MXU tiles when there is enough work; for tiny layers aim for
    # ~2 grid steps (keeps both v7x TensorCores fed) with 16-aligned tiles
    # (bf16 sublane packing).
    if rows >= 512:
        return 256
    half = -(-rows // 2)
    return max(16, _round_up(half, 16))


def conv2d_k4s2_relu(x_nhwc, w_flat, b_row, cin_pad, cout_pad, out_dtype):
    """VALID conv, kernel 4, stride 2, fused bias + ReLU, batched row-tile GEMM.

    x_nhwc: (N, H, W, C) with C >= cin_pad; only the first cin_pad channels are
            used (the rest are zero padding carried by the previous layer).
    w_flat: (16*cin_pad, cout_pad) bf16, (ky, kx, cin)-major flatten of OIHW.
    b_row:  (1, cout_pad) f32.
    """
    N, H, W, _ = x_nhwc.shape
    OH = (H - KSIZE) // STRIDE + 1
    OW = (W - KSIZE) // STRIDE + 1
    M = OH * OW
    K = KSIZE * KSIZE * cin_pad

    # --- glue: im2col patch extraction (pure rearrangement, bf16 stream) ---
    xs = x_nhwc[..., :cin_pad].astype(jnp.bfloat16)
    cols = []
    for ky in range(KSIZE):
        for kx in range(KSIZE):
            cols.append(xs[:, ky:ky + STRIDE * OH:STRIDE,
                           kx:kx + STRIDE * OW:STRIDE, :])       # (N, OH, OW, cin_pad)
    patches = jnp.stack(cols, axis=3).reshape(N * M, K)           # (N*M, 16*cin_pad)

    rows = N * M
    tm = _pick_tm(rows)
    rows_pad = _round_up(rows, tm)
    if rows_pad != rows:
        patches = jnp.pad(patches, ((0, rows_pad - rows), (0, 0)))
    grid = rows_pad // tm

    out_bytes = rows_pad * cout_pad * jnp.dtype(out_dtype).itemsize
    cost = pl.CostEstimate(
        flops=2 * rows_pad * K * cout_pad,
        transcendentals=0,
        bytes_accessed=rows_pad * K * 2 + K * cout_pad * 2 + cout_pad * 4 + out_bytes,
    )

    out = pl.pallas_call(
        _gemm_bias_relu_kernel,
        out_shape=jax.ShapeDtypeStruct((rows_pad, cout_pad), out_dtype),
        grid_spec=pltpu.PrefetchScalarGridSpec(
            num_scalar_prefetch=0,
            grid=(grid,),
            in_specs=[
                pl.BlockSpec((tm, K), lambda i: (i, 0)),          # streaming patch tile
                pl.BlockSpec((K, cout_pad), lambda i: (0, 0)),    # resident weights
                pl.BlockSpec((1, cout_pad), lambda i: (0, 0)),    # resident bias
            ],
            out_specs=pl.BlockSpec((tm, cout_pad), lambda i: (i, 0)),
        ),
        compiler_params=pltpu.CompilerParams(
            dimension_semantics=("parallel",)),
        cost_estimate=cost,
    )(patches, w_flat, b_row)

    return out[:rows].reshape(N, OH, OW, cout_pad)


class ConvEncoderPallas:
    """Pallas port of the PyTorch ConvEncoder (4x Conv2d(k=4, s=2) + ReLU)."""

    def __init__(self, depth=32, key=jax.random.PRNGKey(0)):
        self.depth = depth
        chans = [3, depth, 2 * depth, 4 * depth, 8 * depth]

        # Torch-style init; kept in f32 OIHW for the reference path.
        self.params = []
        for i in range(4):
            cin, cout = chans[i], chans[i + 1]
            key, kw, kb = jax.random.split(key, 3)
            fan_in = cin * KSIZE * KSIZE
            bound = 1.0 / (fan_in ** 0.5)
            w = jax.random.uniform(kw, (cout, cin, KSIZE, KSIZE),
                                   jnp.float32, -bound, bound)    # OIHW, like torch
            bb = jax.random.uniform(kb, (cout,), jnp.float32, -bound, bound)
            self.params.append((w, bb))

        # Padded, flattened, bf16 weights for the Pallas GEMM path.
        self.layers = []
        for i in range(4):
            cin_real, cout_real = chans[i], chans[i + 1]
            cin_pad = _round_up(cin_real, 8)        # 16*cin_pad % 128 == 0
            cout_pad = _round_up(cout_real, 128)    # lane-dense output stores
            w, bb = self.params[i]
            w_hwio = jnp.transpose(w, (2, 3, 1, 0))                 # (KH, KW, Cin, Cout)
            w_hwio = jnp.pad(w_hwio, ((0, 0), (0, 0),
                                      (0, cin_pad - cin_real),
                                      (0, cout_pad - cout_real)))
            w_flat = w_hwio.reshape(KSIZE * KSIZE * cin_pad, cout_pad).astype(jnp.bfloat16)
            b_row = jnp.pad(bb, (0, cout_pad - cout_real)).reshape(1, cout_pad)
            b_row = b_row.astype(jnp.float32)
            self.layers.append((w_flat, b_row, cin_pad, cout_real, cout_pad))

    def __call__(self, obs):
        # obs: (T, B, 3, H, W) float32 (same axis convention as the torch module)
        T, B, C, H, W = obs.shape
        x = obs.reshape(T * B, C, H, W)
        x = jnp.transpose(x, (0, 2, 3, 1))                          # NCHW -> NHWC
        cin_pad0 = self.layers[0][2]
        if cin_pad0 > C:
            x = jnp.pad(x, ((0, 0), (0, 0), (0, 0), (0, cin_pad0 - C)))

        n_layers = len(self.layers)
        for li, (w_flat, b_row, cin_pad, _, cout_pad) in enumerate(self.layers):
            out_dtype = jnp.float32 if li == n_layers - 1 else jnp.bfloat16
            x = conv2d_k4s2_relu(x, w_flat, b_row, cin_pad, cout_pad, out_dtype)

        # Drop channel padding; torch flatten(start_dim=-3) acts on NCHW ->
        # channel-major flatten.
        cout_real_last = self.layers[-1][3]
        x = x[..., :cout_real_last]
        x = jnp.transpose(x, (0, 3, 1, 2)).reshape(T * B, -1)
        x = x.reshape(T, B, -1)
        assert x.shape[-1] == 32 * self.depth
        return x


def _reference_forward(obs, params):
    # Pure-JAX (XLA conv) reference mirroring the kernel numerics:
    # bf16 inputs/weights, f32 accumulation + bias + ReLU, bf16 intermediates.
    T, B, C, H, W = obs.shape
    x = obs.reshape(T * B, C, H, W)
    n = len(params)
    for i, (w, bb) in enumerate(params):
        y = jax.lax.conv_general_dilated(
            x.astype(jnp.bfloat16), w.astype(jnp.bfloat16),
            window_strides=(STRIDE, STRIDE), padding="VALID",
            dimension_numbers=("NCHW", "OIHW", "NCHW"),
            preferred_element_type=jnp.float32)
        y = jnp.maximum(y + bb[None, :, None, None].astype(jnp.float32), 0.0)
        x = y if i == n - 1 else y.astype(jnp.bfloat16)
    return x.astype(jnp.float32).reshape(T, B, -1)


if __name__ == "__main__":
    T, B, H, W, depth = 2, 2, 64, 64, 8   # spatial 64 is implied by the final assert
    key = jax.random.PRNGKey(0)
    k_obs, k_par = jax.random.split(key)
    obs = jax.random.normal(k_obs, (T, B, 3, H, W), jnp.float32)

    enc = ConvEncoderPallas(depth=depth, key=k_par)
    out = jax.block_until_ready(enc(obs))
    assert out.shape == (T, B, 32 * depth)

    ref = _reference_forward(obs, enc.params)
    if not jnp.allclose(out, ref, rtol=1e-2, atol=1e-2):
        max_err = float(jnp.max(jnp.abs(out - ref)))
        raise AssertionError(f"Pallas ConvEncoder mismatch vs reference (max abs err {max_err})")
    print("KERNEL_OK")
</pallas_src>

<mosaic_0001>
module attributes {stable_mosaic.version = 11 : i64} {
  func.func @_gemm_bias_relu_kernel(%arg0: i32, %arg1: memref<256x128xbf16, #tpu.memory_space<vmem>>, %arg2: memref<128x128xbf16, #tpu.memory_space<vmem>>, %arg3: memref<1x128xf32, #tpu.memory_space<vmem>>, %arg4: memref<256x128xbf16, #tpu.memory_space<vmem>>) attributes {dimension_semantics = [#tpu.dimension_semantics<parallel>], iteration_bounds = array<i64: 16>, scalar_prefetch = 0 : i64, scratch_operands = 0 : i64, tpu.core_type = #tpu.core_type<tc>, window_params = [{transform_indices = @transform_0, window_bounds = array<i64: 256, 128>}, {pipeline_mode = #tpu.pipeline_mode<synchronous>, transform_indices = @transform_1, window_bounds = array<i64: 128, 128>}, {pipeline_mode = #tpu.pipeline_mode<synchronous>, transform_indices = @transform_2, window_bounds = array<i64: 1, 128>}, {transform_indices = @transform_3, window_bounds = array<i64: 256, 128>}]} {
    %c0 = arith.constant 0 : index
    %c0_0 = arith.constant 0 : index
    %0 = vector.load %arg1[%c0, %c0_0] : memref<256x128xbf16, #tpu.memory_space<vmem>>, vector<256x128xbf16>
    %c0_1 = arith.constant 0 : index
    %c0_2 = arith.constant 0 : index
    %1 = vector.load %arg2[%c0_1, %c0_2] : memref<128x128xbf16, #tpu.memory_space<vmem>>, vector<128x128xbf16>
    %cst = arith.constant dense<0.000000e+00> : vector<256x128xf32>
    %2 = tpu.matmul %0, %1, %cst {dimension_numbers = #tpu.dot_dimension_numbers<[1], [0], [0], [1], [0, 0, 1, 1], [], []>} : vector<256x128xbf16>, vector<128x128xbf16>, vector<256x128xf32> -> vector<256x128xf32>
    %c0_3 = arith.constant 0 : index
    %c0_4 = arith.constant 0 : index
    %3 = vector.load %arg3[%c0_3, %c0_4] : memref<1x128xf32, #tpu.memory_space<vmem>>, vector<1x128xf32>
    %4 = vector.broadcast %3 : vector<1x128xf32> to vector<256x128xf32>
    %5 = arith.addf %2, %4 : vector<256x128xf32>
    %cst_5 = arith.constant 0.000000e+00 : f32
    %6 = vector.broadcast %cst_5 : f32 to vector<256x128xf32>
    %7 = arith.maximumf %5, %6 : vector<256x128xf32>
    %8 = arith.truncf %7 : vector<256x128xf32> to vector<256x128xbf16>
    %c0_6 = arith.constant 0 : index
    %c0_7 = arith.constant 0 : index
    %9 = vector.load %arg4[%c0_6, %c0_7] : memref<256x128xbf16, #tpu.memory_space<vmem>>, vector<256x128xbf16>
    tpu.vector_store %arg4[%c0_6, %c0_7], %8 {strides = array<i32>} : memref<256x128xbf16, #tpu.memory_space<vmem>>, vector<256x128xbf16>,
    return
  }
  func.func @transform_0(%arg0: i32) -> (i32, i32) {
    %c0_i32 = arith.constant 0 : i32
    %c0_i32_0 = arith.constant 0 : i32
    return %arg0, %c0_i32 : i32, i32
  }
  func.func @transform_1(%arg0: i32) -> (i32, i32) {
    %c0_i32 = arith.constant 0 : i32
    %c0_i32_0 = arith.constant 0 : i32
    %c0_i32_1 = arith.constant 0 : i32
    return %c0_i32, %c0_i32_0 : i32, i32
  }
  func.func @transform_2(%arg0: i32) -> (i32, i32) {
    %c0_i32 = arith.constant 0 : i32
    %c0_i32_0 = arith.constant 0 : i32
    %c0_i32_1 = arith.constant 0 : i32
    return %c0_i32, %c0_i32_0 : i32, i32
  }
  func.func @transform_3(%arg0: i32) -> (i32, i32) {
    %c0_i32 = arith.constant 0 : i32
    %c0_i32_0 = arith.constant 0 : i32
    return %arg0, %c0_i32 : i32, i32
  }
}

</mosaic_0001>

<bundles_post_ra>
// kernel: tpu_custom_call.1
= control target key start
LH: loop header
LB: loop body
LE: loop exit
PB: predicated region body
PF: predicated region fallthrough
CT: control target
= control target key end

     0   :  { %8 = vsyncpa [#allocation3], 0  ;;  %s1641_s0 = inlined_call_operand.hbm [shape: bf16[4096,128], index: 0, kind: input, shape index: {}]   ;;  %s1642_s1 = inlined_call_operand.hbm [shape: bf16[128,128], index: 1, kind: input, shape index: {}]   ;;  %s1643_s2 = inlined_call_operand.vmem [shape: f32[1,128], index: 2, kind: input, shape index: {}]   ;;  %s1644_s3 = inlined_call_operand.hbm [shape: bf16[4096,128], index: 3, kind: output, shape index: {}]  }
   0x1   :  { %10 = vsyncpa [#allocation3 + $0x1], 0 }
   0x2   :  { %11 = vsyncpa [#allocation6], 0 }
   0x3   :  { %12 = vsyncpa [#allocation4], 0 }
   0x4   :  { %14 = vsyncpa [#allocation4 + $0x1], 0  ;;  %s1382_s12 = smov 0   ;;  %s1384_s13 = smov 0  }
   0x5   :  { %s1386_s14 = smov 0   ;;  %s1388_s15 = smov 0  }
   0x6 LB: > { %s1403_s16 = sadd.s32 4294967295, %s1353_s15   ;;  %s856_s17 = sadd.s32 4294967294, %s1353_s15   ;;  %s1353_s15 = sphi %s1388_s15, %s1665_s15   ;;  %s1349_s14 = sphi %s1386_s14, %s1664_s14   ;;  %s1345_s13 = sphi %s1384_s13, %s1663_s13   ;;  %s1341_s12 = sphi %s1382_s12, %s1662_s12  }
   0x7   : > { %p40_p0 = scmp.ne.s32.totalorder %s1345_s13, %s1341_s12  ;;  %p1645_p1 = scmp.eq.s32.totalorder %s1403_s16, 0 }
   0x8   : > { %p112_p3 = scmp.eq.s32.totalorder %s856_s17, 15  ;;  %p857_p5 = scmp.ge.s32.totalorder %s1353_s15, 1 }
   0x9   : > { %p1412_p4 = por %p1645_p1, %p40_p0  ;;  %p119_p7 = scmp.lt.s32.totalorder %s1353_s15, 17 }
   0xa   : > { %p1417_p6 = por %p112_p3, %p40_p0  ;;  %s1355_s21 = smov [#allocation5]  }
   0xb   : > { %s1649_s18 = scalar_select %p1412_p4, 1, 0 }
   0xc   : > { %s1650_s19 = scalar_select %p1417_p6, 1, 0 }
   0xd   : > { %p1422_p8 = pnand %p857_p5, %p119_p7  ;;  %s131_s22 = sshll.u32 %s1355_s21, 4  ;;  %s132_s22 = int_to_ptr.vmem [resolvable:$true] %s131_s22 }
   0xe   : > { %s1435_s24 = sadd.s32 1, %s1353_s15   ;;  %s27_s25 = sadd.s32 1, %s1349_s14 }
   0xf   : > { %s1651_s20 = scalar_select %p1422_p8, 1, 0 }
  0x10   : > { %p1154_p9 = pneg %p1422_p8  ;;  %s24_s26 = ssub.s32 %s1353_s15, %s1435_s24 }
  0x11   : > { %s1242_s27 = scalar_lea.vmem %s132_s22, 1024  ;;  %p1250_p3 = scmp.lt.s32.totalorder %s132_s22, %s132_s22 }
  0x12   : > { %p1430_p10 = pnand %p1154_p9, %p1645_p1  ;;  %p1243_p12 = scmp.ne.s32.totalorder %s132_s22, %s1242_s27 }
  0x13   : > { %p1251_p5 = scmp.lt.s32.totalorder %s1242_s27, %s1242_s27 }
  0x14   : > { %p1233_p11 = pneg %p1430_p10 }
  0x15   : > { %p1252_p7 = por %p1251_p5, %p1250_p3 }
  0x16   : > { %p1245_p13 = pnand %p1243_p12, %p1233_p11 }
  0x18   : > { %p1246_p0 = pneg %p1245_p13 }
  0x1a   : > { %p1253_p2 = pnand %p1252_p7, %p1246_p0 }
  0x1c   : > { %1256 = shalt.err (!%p1253_p2)
}
  0x1d   : > { %s1356_s28 = smov 64   ;;  %s1357_s29 = smov 4  }
  0x1e   : > { %1157 = dma.hbm_to_vmem [thread:$0]  (!%p1430_p10), %s1642_s1, 1024, %s132_s22, [#allocation6], %s1356_s28, %s1356_s28, %s1357_s29  }
  0x1f   : > { %p25_p2 = scmp.eq.s32.totalorder %s24_s26, 0  ;;  %p34_p9 = scmp.ne.s32.totalorder %s1349_s14, %s1345_s13 }
  0x20   : > { %p35_p11 = scmp.eq.s32.totalorder %s1353_s15, 0  ;;  %p1167_p12 = scmp.lt.s32.totalorder %s1353_s15, 16 }
  0x21   : > { %s1455_s5 = scalar_select %p25_p2, %s1349_s14, %s27_s25  }
  0x22   : > { %p36_p13 = por %p35_p11, %p34_p9  ;;  %p1653_p0 = scmp.eq.s32.totalorder %s1403_s16, 15 }
  0x23   : > { %s148_s7 = sand.u32 1, %s1349_s14   ;;  %s929_s8 = sshll.u32 %s1353_s15, 11 }
  0x24   : > { %p1459_p3 = por %p1653_p0, %p34_p9  ;;  %s860_s9 = sshll.u32 %s148_s7, 7 }
  0x25   : > { %s1468_s17 = scalar_lea.hbm %s1641_s0, %s929_s8  ;;  %s152_s21 = scalar_lea.vmem [#allocation2], %s860_s9 }
  0x26   : > { %s1654_s6 = scalar_select %p1459_p3, 1, 0 }
  0x27   : > { %s159_s22 = sshll.u32 %s152_s21, 4  ;;  %p1470_p10 = pnand %p1167_p12, %p36_p13  ;;  %s1474_s22 = int_to_ptr.vmem [resolvable:$true] %s159_s22 }
  0x28   : > { %s1476_s25 = scalar_lea.sflag [#allocation3], %s148_s7  ;;  %s1257_s26 = scalar_lea.hbm %s1468_s17, 2048 }
  0x29   : > { %p1258_p5 = scmp.ne.s32.totalorder %s1468_s17, %s1257_s26  ;;  %p1259_p7 = pneg %p1470_p10 }
  0x2a   : > { %s1262_s4 = scalar_lea.hbm %s1641_s0, 32768  ;;  %p1263_p11 = scmp.lt.s32.totalorder %s1468_s17, %s1641_s0 }
  0x2b   : > { %p1260_p2 = pnand %p1259_p7, %p1258_p5  ;;  %p1264_p12 = scmp.lt.s32.totalorder %s1262_s4, %s1257_s26 }
  0x2d   : > { %p1261_p9 = pneg %p1260_p2  ;;  %p1265_p13 = por %p1264_p12, %p1263_p11 }
  0x2f   : > { %p1266_p0 = pnand %p1265_p13, %p1261_p9 }
  0x31   : > { %1269 = shalt.err (!%p1266_p0)
}
  0x32   : > { %s1270_s7 = scalar_lea.vmem %s1474_s22, 2048  ;;  %s1358_s10 = smov [#allocation2]  }
  0x33   : > { %p1271_p1 = scmp.ne.s32.totalorder %s1474_s22, %s1270_s7  ;;  %s1275_s11 = sshll.u32 %s1358_s10, 4  ;;  %s1276_s11 = int_to_ptr.vmem [resolvable:$false] %s1275_s11 }
  0x34   : > { %s1277_s21 = scalar_lea.vmem %s1276_s11, 4096  ;;  %p1278_p2 = scmp.lt.s32.totalorder %s1474_s22, %s1276_s11 }
  0x35   : > { %p1273_p6 = pnand %p1271_p1, %p1259_p7  ;;  %p1279_p3 = scmp.lt.s32.totalorder %s1277_s21, %s1270_s7 }
  0x37   : > { %p1274_p5 = pneg %p1273_p6  ;;  %p1280_p4 = por %p1279_p3, %p1278_p2 }
  0x39   : > { %p1281_p8 = pnand %p1280_p4, %p1274_p5 }
  0x3b   : > { %1284 = shalt.err (!%p1281_p8)
}
  0x3c   : > { %1161 = dma.hbm_to_vmem [thread:$0]  (!%p1470_p10), %s1468_s17, 2048, %s1474_s22, %s1476_s25, %s1356_s28, %s1356_s28, %s1357_s29  }
  0x3d   : > { %p1656_p1 = scmp.ne.s32.totalorder %s1651_s20, 0 }
  0x3e   : > { %s1503_s26 = sand.u32 (!%p1656_p1), 1, %s1345_s13   ;;  %p1657_p4 = scmp.ne.s32.totalorder (!%p1656_p1), %s1649_s18, 0 }
  0x3f   : > { %171 = sbr.rel (%p1656_p1) target bundleno = 348 (0x15c), region = 32  ;;  %s864_s27 = sshll.u32 (!%p1656_p1), %s1503_s26, 7 }
  0x40   : > { %s174_s30 = scalar_lea.sflag (!%p1656_p1), [#allocation3], %s1503_s26  ;;  %s1509_s23 = scalar_lea.vmem (!%p1656_p1), [#allocation2], %s864_s27 }
  0x44   : > { %1328 = dma.done.wait (%p1657_p4), %s174_s30, 2048  }
  0x45   : > { %1330 = vsyncadd (%p1657_p4), %s174_s30, 4294965248  ;;  %p1658_p6 = scmp.eq.s32.totalorder %s1403_s16, 0 }
  0x47   : > { %1332 = dma.done.wait (%p1658_p6), [#allocation6], 1024   ;;  %p1659_p8 = pmov %p1658_p6 }
  0x48   : > { %v1207_v0 = vld [vmem:[#allocation5 + $0x38] sm:$0xff]   ;;  %v1208_v1 = vld [vmem:[#allocation5 + $0x30] sm:$0xff]   ;;  %v1209_v2 = vld [vmem:[#allocation5 + $0x28] sm:$0xff]   ;;  %s1552_s28 = scalar_lea.vmem [#allocation7], %s864_s27  ;;  %s962_s29 = sshll.u32 %s1403_s16, 11 }
  0x49   : > { %1334 = vsyncadd (%p1659_p8), [#allocation6], 4294966272  ;;  %1082 = vmatprep.subr.bf16.mxu0 %v1207_v0  ;;  %1130 = vmatprep.subr.bf16.mxu1 %v1207_v0  ;;  %v1210_v3 = vld [vmem:[#allocation5 + $0x20] sm:$0xff]   ;;  %v1211_v6 = vld [vmem:[#allocation5 + $0x18] sm:$0xff]   ;;  %s773_s17 = sshll.u32 %s1552_s28, 4  ;;  %s1593_s4 = scalar_lea.hbm %s1644_s3, %s962_s29  ;;  %s1595_s17 = int_to_ptr.vmem [resolvable:$true] %s773_s17 }
  0x4a   : > { %1083 = vmatpush3.bf16.msra.mxu0 %v1207_v0  ;;  %1138 = vmatpush3.bf16.msra.mxu1 %v1207_v0  ;;  %v1215_v4 = vld [vmem:[%s1509_s23] sm:$0xff]   ;;  %v1212_v7 = vld [vmem:[#allocation5 + $0x10] sm:$0xff]   ;;  %v1213_v8 = vld [vmem:[#allocation5 + $0x8] sm:$0xff]   ;;  %s760_s16 = scalar_lea.sflag [#allocation4], %s1503_s26  ;;  %s1285_s8 = scalar_lea.vmem %s1595_s17, 2048 }
  0x4b   : > { %1084 = vmatprep.subr.bf16.mxu0 %v1208_v1  ;;  %1131 = vmatprep.subr.bf16.mxu1 %v1208_v1  ;;  %v1216_v5 = vld [vmem:[%s1509_s23 + $0x40] sm:$0xff]   ;;  %v1217_v10 = vld [vmem:[%s1509_s23 + $0x8] sm:$0xff]   ;;  %v1219_v12 = vld [vmem:[%s1509_s23 + $0x10] sm:$0xff]   ;;  %p1286_p3 = scmp.ne.s32.totalorder %s1595_s17, %s1285_s8  ;;  %p1660_p10 = scmp.ne.s32.totalorder %s1654_s6, 0 }
  0x4c   : > { %1098 = vmatprep.mubr.bf16.mxu0 %v1215_v4  ;;  %1114 = vmatprep.mubr.bf16.mxu1 %v1216_v5  ;;  %v1214_v9 = vld [vmem:[#allocation5] sm:$0xff]   ;;  %v1218_v11 = vld [vmem:[%s1509_s23 + $0x48] sm:$0xff]   ;;  %v1220_v13 = vld [vmem:[%s1509_s23 + $0x50] sm:$0xff]   ;;  %s1359_s9 = smov [#allocation7]  }
  0x4d   : > { %v1221_v14 = vld [vmem:[%s1509_s23 + $0x18] sm:$0xff]   ;;  %v1223_v16 = vld [vmem:[%s1509_s23 + $0x20] sm:$0xff]   ;;  %v1225_v18 = vld [vmem:[%s1509_s23 + $0x28] sm:$0xff]   ;;  %p1287_p7 = pnand %p1286_p3, %p1660_p10  ;;  %s1289_s7 = sshll.u32 %s1359_s9, 4  ;;  %s1290_s7 = int_to_ptr.vmem [resolvable:$false] %s1289_s7 }
  0x4e   : > { %1085 = vmatpush3.bf16.msra.mxu0 %v1208_v1  ;;  %1139 = vmatpush3.bf16.msra.mxu1 %v1208_v1  ;;  %v1222_v15 = vld [vmem:[%s1509_s23 + $0x58] sm:$0xff]   ;;  %v1224_v17 = vld [vmem:[%s1509_s23 + $0x60] sm:$0xff]   ;;  %v1226_v19 = vld [vmem:[%s1509_s23 + $0x68] sm:$0xff]   ;;  %s1291_s10 = scalar_lea.vmem %s1290_s7, 4096  ;;  %p1292_p11 = scmp.lt.s32.totalorder %s1595_s17, %s1290_s7 }
  0x4f   : > { %1086 = vmatprep.subr.bf16.mxu0 %v1209_v2  ;;  %1132 = vmatprep.subr.bf16.mxu1 %v1209_v2  ;;  %v1227_v20 = vld [vmem:[%s1509_s23 + $0x30] sm:$0xff]   ;;  %v1229_v22 = vld [vmem:[%s1509_s23 + $0x38] sm:$0xff]   ;;  %v1538_v24 = vld [vmem:[%s1643_s2] ss:$0 sm:$0xff]  ;;  %p1288_p9 = pneg %p1287_p7  ;;  %p1293_p12 = scmp.lt.s32.totalorder %s1291_s10, %s1285_s8 }
  0x50   : > { %v1228_v21 = vld [vmem:[%s1509_s23 + $0x70] sm:$0xff]   ;;  %v1230_v23 = vld [vmem:[%s1509_s23 + $0x78] sm:$0xff]  }
  0x51   : > { %p1294_p13 = por %p1293_p12, %p1292_p11 }
  0x52   : > { %1087 = vmatpush3.bf16.msra.mxu0 %v1209_v2  ;;  %1140 = vmatpush3.bf16.msra.mxu1 %v1209_v2 }
  0x53   : > { %1088 = vmatprep.subr.bf16.mxu0 %v1210_v3  ;;  %1133 = vmatprep.subr.bf16.mxu1 %v1210_v3  ;;  %p1295_p0 = pnand %p1294_p13, %p1288_p9 }
  0x56   : > { %1089 = vmatpush3.bf16.msra.mxu0 %v1210_v3  ;;  %1141 = vmatpush3.bf16.msra.mxu1 %v1210_v3 }
  0x57   : > { %1090 = vmatprep.subr.bf16.mxu0 %v1211_v6  ;;  %1134 = vmatprep.subr.bf16.mxu1 %v1211_v6 }
  0x5a   : > { %1091 = vmatpush3.bf16.msra.mxu0 %v1211_v6  ;;  %1142 = vmatpush3.bf16.msra.mxu1 %v1211_v6 }
  0x5b   : > { %1092 = vmatprep.subr.bf16.mxu0 %v1212_v7  ;;  %1135 = vmatprep.subr.bf16.mxu1 %v1212_v7 }
  0x5e   : > { %1093 = vmatpush3.bf16.msra.mxu0 %v1212_v7  ;;  %1143 = vmatpush3.bf16.msra.mxu1 %v1212_v7 }
  0x5f   : > { %1094 = vmatprep.subr.bf16.mxu0 %v1213_v8  ;;  %1136 = vmatprep.subr.bf16.mxu1 %v1213_v8 }
  0x62   : > { %1095 = vmatpush3.bf16.msra.mxu0 %v1213_v8  ;;  %1144 = vmatpush3.bf16.msra.mxu1 %v1213_v8 }
  0x63   : > { %1096 = vmatprep.subr.bf16.mxu0 %v1214_v9  ;;  %1137 = vmatprep.subr.bf16.mxu1 %v1214_v9 }
  0x66   : > { %1097 = vmatpush3.bf16.msra.mxu0 %v1214_v9  ;;  %1145 = vmatpush3.bf16.msra.mxu1 %v1214_v9 }
  0x69   : > { %1099 = vmatmul.mubr.bf16.vlgmr.msra.gmra.mxu0 %v1217_v10  ;;  %1115 = vmatmul.mubr.bf16.vlgmr.msra.gmra.mxu1 %v1218_v11 }
  0x6a   : > { %1102 = vmatprep.mubr.bf16.mxu0 %v1219_v12  ;;  %1118 = vmatprep.mubr.bf16.mxu1 %v1220_v13 }
  0x71   : > { %1103 = vmatmul.mubr.bf16.gmra.mxu0 %v1221_v14  ;;  %1119 = vmatmul.mubr.bf16.gmra.mxu1 %v1222_v15 }
  0x72   : > { %1106 = vmatprep.mubr.bf16.mxu0 %v1223_v16  ;;  %1122 = vmatprep.mubr.bf16.mxu1 %v1224_v17 }
  0x79   : > { %1107 = vmatmul.mubr.bf16.gmra.mxu0 %v1225_v18  ;;  %1123 = vmatmul.mubr.bf16.gmra.mxu1 %v1226_v19 }
  0x7a   : > { %1110 = vmatprep.mubr.bf16.mxu0 %v1227_v20  ;;  %1126 = vmatprep.mubr.bf16.mxu1 %v1228_v21 }
  0x81   : > { %1111 = vmatmul.mubr.bf16.gmra.mxu0 %v1229_v22  ;;  %1127 = vmatmul.mubr.bf16.gmra.mxu1 %v1230_v23 }
 0x129   : > { %v1100_v25 = vpop.f32.mrf.mxu0  ;;  %v1116_v26 = vpop.f32.mrf.mxu1 }
 0x12a   : > { %v449_v27 = vadd.f32 %v1100_v25, %v1538_v24  ;;  %v513_v28 = vadd.f32 %v1116_v26, %v1538_v24 }
 0x12b   : > { %v440_v29 = vpop.f32.mrf.mxu0  ;;  %v504_v30 = vpop.f32.mrf.mxu1 }
 0x12c   : > { %v441_v31 = vadd.f32 %v1538_v24, %v440_v29  ;;  %v505_v32 = vadd.f32 %v1538_v24, %v504_v30  ;;  %v569_v37 = vmax.f32 %v449_v27, 0.0  ;;  %v585_v38 = vmax.f32 %v513_v28, 0.0 }
 0x12d   : > { %v1101_v33 = vpop.f32.mrf.mxu0  ;;  %v1117_v34 = vpop.f32.mrf.mxu1 }
 0x12e   : > { %v452_v35 = vadd.f32 %v1101_v33, %v1538_v24  ;;  %v516_v36 = vadd.f32 %v1117_v34, %v1538_v24  ;;  %v567_v45 = vmax.f32 %v441_v31, 0.0  ;;  %v583_v46 = vmax.f32 %v505_v32, 0.0 }
 0x12f   : > { %v443_v39 = vpop.f32.mrf.mxu0  ;;  %v507_v40 = vpop.f32.mrf.mxu1 }
 0x130   : > { %v570_v41 = vmax.f32 %v452_v35, 0.0  ;;  %v586_v42 = vmax.f32 %v516_v36, 0.0  ;;  %v444_v43 = vadd.f32 %v1538_v24, %v443_v39  ;;  %v508_v44 = vadd.f32 %v1538_v24, %v507_v40 }
 0x131   : > { %v1104_v47 = vpop.f32.mrf.mxu0  ;;  %v1120_v48 = vpop.f32.mrf.mxu1 }
 0x132   : > { %v971_v49 = vpack.c.bf16 %v570_v41, %v569_v37  ;;  %v1011_v50 = vpack.c.bf16 %v586_v42, %v585_v38  ;;  %v568_v51 = vmax.f32 %v444_v43, 0.0  ;;  %v584_v52 = vmax.f32 %v508_v44, 0.0 }
 0x133   : > { %v465_v53 = vadd.f32 %v1104_v47, %v1538_v24  ;;  %v529_v54 = vadd.f32 %v1120_v48, %v1538_v24  ;;  %v456_v55 = vpop.f32.mrf.mxu0  ;;  %v520_v56 = vpop.f32.mrf.mxu1 }
 0x134   : > { %1043 = vst [vmem:[%s1552_s28 + $0x8] sm:$0xff] %v971_v49   ;;  %1051 = vst [vmem:[%s1552_s28 + $0x48] sm:$0xff] %v1011_v50   ;;  %v966_v57 = vpack.c.bf16 %v568_v51, %v567_v45  ;;  %v1006_v58 = vpack.c.bf16 %v584_v52, %v583_v46  ;;  %v457_v59 = vadd.f32 %v1538_v24, %v456_v55 }
 0x135   : > { %v521_v60 = vadd.f32 %v1538_v24, %v520_v56  ;;  %v1105_v61 = vpop.f32.mrf.mxu0  ;;  %v1121_v62 = vpop.f32.mrf.mxu1  ;;  %v573_v1 = vmax.f32 %v465_v53, 0.0  ;;  %v589_v2 = vmax.f32 %v529_v54, 0.0 }
 0x136   : > { %967 = vst [vmem:[%s1552_s28] sm:$0xff] %v966_v57   ;;  %1050 = vst [vmem:[%s1552_s28 + $0x40] sm:$0xff] %v1006_v58   ;;  %v468_v63 = vadd.f32 %v1105_v61, %v1538_v24  ;;  %v532_v0 = vadd.f32 %v1121_v62, %v1538_v24  ;;  %v571_v9 = vmax.f32 %v457_v59, 0.0 }
 0x137   : > { %v459_v3 = vpop.f32.mrf.mxu0  ;;  %v523_v4 = vpop.f32.mrf.mxu1  ;;  %v587_v10 = vmax.f32 %v521_v60, 0.0 }
 0x138   : > { %v574_v5 = vmax.f32 %v468_v63, 0.0  ;;  %v590_v6 = vmax.f32 %v532_v0, 0.0  ;;  %v460_v7 = vadd.f32 %v1538_v24, %v459_v3  ;;  %v524_v8 = vadd.f32 %v1538_v24, %v523_v4 }
 0x139   : > { %v1108_v11 = vpop.f32.mrf.mxu0  ;;  %v1124_v12 = vpop.f32.mrf.mxu1 }
 0x13a   : > { %v981_v13 = vpack.c.bf16 %v574_v5, %v573_v1  ;;  %v1021_v14 = vpack.c.bf16 %v590_v6, %v589_v2  ;;  %v572_v15 = vmax.f32 %v460_v7, 0.0  ;;  %v588_v16 = vmax.f32 %v524_v8, 0.0 }
 0x13b   : > { %v481_v17 = vadd.f32 %v1108_v11, %v1538_v24  ;;  %v545_v18 = vadd.f32 %v1124_v12, %v1538_v24  ;;  %v472_v19 = vpop.f32.mrf.mxu0  ;;  %v536_v20 = vpop.f32.mrf.mxu1 }
 0x13c   : > { %1045 = vst [vmem:[%s1552_s28 + $0x18] sm:$0xff] %v981_v13   ;;  %1053 = vst [vmem:[%s1552_s28 + $0x58] sm:$0xff] %v1021_v14   ;;  %v976_v21 = vpack.c.bf16 %v572_v15, %v571_v9  ;;  %v1016_v22 = vpack.c.bf16 %v588_v16, %v587_v10  ;;  %v473_v23 = vadd.f32 %v1538_v24, %v472_v19 }
 0x13d   : > { %v537_v25 = vadd.f32 %v1538_v24, %v536_v20  ;;  %v1109_v26 = vpop.f32.mrf.mxu0  ;;  %v1125_v27 = vpop.f32.mrf.mxu1  ;;  %v577_v30 = vmax.f32 %v481_v17, 0.0  ;;  %v593_v31 = vmax.f32 %v545_v18, 0.0 }
 0x13e   : > { %1044 = vst [vmem:[%s1552_s28 + $0x10] sm:$0xff] %v976_v21   ;;  %1052 = vst [vmem:[%s1552_s28 + $0x50] sm:$0xff] %v1016_v22   ;;  %v484_v28 = vadd.f32 %v1109_v26, %v1538_v24  ;;  %v548_v29 = vadd.f32 %v1125_v27, %v1538_v24  ;;  %v575_v38 = vmax.f32 %v473_v23, 0.0 }
 0x13f   : > { %v475_v32 = vpop.f32.mrf.mxu0  ;;  %v539_v33 = vpop.f32.mrf.mxu1  ;;  %v591_v39 = vmax.f32 %v537_v25, 0.0 }
 0x140   : > { %v578_v34 = vmax.f32 %v484_v28, 0.0  ;;  %v594_v35 = vmax.f32 %v548_v29, 0.0  ;;  %v476_v36 = vadd.f32 %v1538_v24, %v475_v32  ;;  %v540_v37 = vadd.f32 %v1538_v24, %v539_v33 }
 0x141   : > { %v1112_v40 = vpop.f32.mrf.mxu0  ;;  %v1128_v41 = vpop.f32.mrf.mxu1 }
 0x142   : > { %v991_v42 = vpack.c.bf16 %v578_v34, %v577_v30  ;;  %v1031_v43 = vpack.c.bf16 %v594_v35, %v593_v31  ;;  %v576_v44 = vmax.f32 %v476_v36, 0.0  ;;  %v592_v45 = vmax.f32 %v540_v37, 0.0 }
 0x143   : > { %v497_v46 = vadd.f32 %v1112_v40, %v1538_v24  ;;  %v561_v47 = vadd.f32 %v1128_v41, %v1538_v24  ;;  %v488_v48 = vpop.f32.mrf.mxu0  ;;  %v552_v49 = vpop.f32.mrf.mxu1 }
 0x144   : > { %1047 = vst [vmem:[%s1552_s28 + $0x28] sm:$0xff] %v991_v42   ;;  %1055 = vst [vmem:[%s1552_s28 + $0x68] sm:$0xff] %v1031_v43   ;;  %v986_v50 = vpack.c.bf16 %v576_v44, %v575_v38  ;;  %v1026_v51 = vpack.c.bf16 %v592_v45, %v591_v39  ;;  %v489_v52 = vadd.f32 %v1538_v24, %v488_v48 }
 0x145   : > { %v553_v53 = vadd.f32 %v1538_v24, %v552_v49  ;;  %v1113_v54 = vpop.f32.mrf.mxu0  ;;  %v1129_v55 = vpop.f32.mrf.mxu1  ;;  %v581_v58 = vmax.f32 %v497_v46, 0.0  ;;  %v597_v59 = vmax.f32 %v561_v47, 0.0 }
 0x146   : > { %1046 = vst [vmem:[%s1552_s28 + $0x20] sm:$0xff] %v986_v50   ;;  %1054 = vst [vmem:[%s1552_s28 + $0x60] sm:$0xff] %v1026_v51   ;;  %v500_v56 = vadd.f32 %v1113_v54, %v1538_v24  ;;  %v564_v57 = vadd.f32 %v1129_v55, %v1538_v24  ;;  %v579_v2 = vmax.f32 %v489_v52, 0.0 }
 0x147   : > { %v491_v60 = vpop.f32.mrf.mxu0  ;;  %v555_v61 = vpop.f32.mrf.mxu1  ;;  %v595_v3 = vmax.f32 %v553_v53, 0.0 }
 0x148   : > { %v582_v62 = vmax.f32 %v500_v56, 0.0  ;;  %v598_v63 = vmax.f32 %v564_v57, 0.0  ;;  %v492_v0 = vadd.f32 %v1538_v24, %v491_v60  ;;  %v556_v1 = vadd.f32 %v1538_v24, %v555_v61 }
 0x14a   : > { %v1001_v4 = vpack.c.bf16 %v582_v62, %v581_v58  ;;  %v1041_v5 = vpack.c.bf16 %v598_v63, %v597_v59  ;;  %v580_v6 = vmax.f32 %v492_v0, 0.0  ;;  %v596_v7 = vmax.f32 %v556_v1, 0.0 }
 0x14c   : > { %1049 = vst [vmem:[%s1552_s28 + $0x38] sm:$0xff] %v1001_v4   ;;  %1057 = vst [vmem:[%s1552_s28 + $0x78] sm:$0xff] %v1041_v5   ;;  %v996_v24 = vpack.c.bf16 %v580_v6, %v579_v2  ;;  %v1036_v8 = vpack.c.bf16 %v596_v7, %v595_v3 }
 0x14e   : > { %1048 = vst [vmem:[%s1552_s28 + $0x30] sm:$0xff] %v996_v24   ;;  %1056 = vst [vmem:[%s1552_s28 + $0x70] sm:$0xff] %v1036_v8  }
 0x14f   : > { %1298 = shalt.err (!%p1295_p0)
}
 0x150   : > { %s1299_s11 = scalar_lea.hbm %s1593_s4, 2048  ;;  %s1303_s30 = scalar_lea.hbm %s1644_s3, 32768 }
 0x151   : > { %p1300_p5 = scmp.ne.s32.totalorder %s1593_s4, %s1299_s11  ;;  %p1304_p4 = scmp.lt.s32.totalorder %s1593_s4, %s1644_s3 }
 0x152   : > { %p1305_p6 = scmp.lt.s32.totalorder %s1303_s30, %s1299_s11 }
 0x153   : > { %p1301_p2 = pnand %p1300_p5, %p1660_p10 }
 0x154   : > { %p1306_p8 = por %p1305_p6, %p1304_p4 }
 0x155   : > { %p1302_p1 = pneg %p1301_p2 }
 0x157   : > { %p1307_p3 = pnand %p1306_p8, %p1302_p1 }
 0x159   : > { %1310 = shalt.err (!%p1307_p3)
}
 0x15a   : > { %s1360_s20 = smov 64   ;;  %s1361_s28 = smov 4  }
 0x15b   : > { %1152 = dma.vmem_to_hbm [thread:$0]  (%p1660_p10), %s1595_s17, 2048, %s1593_s4, %s760_s16, %s1360_s20, %s1360_s20, %s1361_s28  }
 0x15c PF: > { %p1169_p7 = scmp.ge.s32.totalorder %s1353_s15, 2  ;;  %s788_s29 = sand.u32 1, %s1341_s12  }
 0x15d   : > { %p1661_p9 = scmp.ne.s32.totalorder %s1650_s19, 0  ;;  %s789_s22 = scalar_lea.sflag [#allocation4], %s788_s29 }
 0x15f   : > { %p1163_p11 = pnand %p1169_p7, %p1661_p9 }
 0x161   : > { %p1164_p12 = pneg %p1163_p11 }
 0x163   : > { %1336 = dma.done.wait (%p1164_p12), %s789_s22, 2048  }
 0x164   : > { %1338 = vsyncadd (%p1164_p12), %s789_s22, 4294965248  ;;  %p17_p13 = scmp.ge.s32.totalorder %s1435_s24, 18   ;;  %s1662_s12 = smov %s1345_s13 }
 0x165   : > { %s1663_s13 = smov %s1349_s14  ;;  %s1664_s14 = smov %s1455_s5 }
 0x166   : > { %s1665_s15 = smov %s1435_s24  ;;  %19 = sbr.rel (!%p17_p13) target bundleno = 6 (0x6), region = 81 }
 0x16b   :  { %794 = vsyncpa [#allocation3], 1 }
 0x16c   :  { %796 = vsyncpa [#allocation3 + $0x1], 1 }
 0x16d   :  { %797 = vsyncpa [#allocation6], 1 }
 0x16e   :  { %798 = vsyncpa [#allocation4], 1 }
 0x16f   :  { %800 = vsyncpa [#allocation4 + $0x1], 1 }

</bundles_post_ra>
